<compile_context>
chip_gen: v6e
topology: v6e:2x2x1
jax: 0.10.0
libtpu: 0.0.40
codegen_flags: <defaults>
</compile_context>

<pallas_src>
import functools

import jax
import jax.numpy as jnp
from jax.experimental import pallas as pl
from jax.experimental.pallas import tpu as pltpu


def _round_up(x, m):
    return (x + m - 1) // m * m


def lm_criterion_kernel(inp_ref, tgt_ref, msk_ref, out_ref):
    j = pl.program_id(1)                 # vocab-tile index (reduction axis, last)
    nv = pl.num_programs(1)

    @pl.when(j == 0)
    def _init():
        out_ref[...] = jnp.zeros_like(out_ref)

    tm, tv = inp_ref.shape
    # Global vocab index of every lane in this tile.
    vocab_iota = jax.lax.broadcasted_iota(jnp.int32, (tm, tv), 1) + j * tv
    eq = vocab_iota == tgt_ref[...]                       # (tm, tv) vs (tm, 1)
    # Select (no one-hot multiply -> no -inf * 0 NaN), upcast, reduce over vocab.
    sel = jnp.where(eq, inp_ref[...], 0).astype(jnp.float32)
    out_ref[...] += jnp.sum(sel, axis=1, keepdims=True)   # (tm, 1)

    @pl.when(j == nv - 1)
    def _finalize():
        # per-row masked NLL partial; padded rows have mask == 0.
        out_ref[...] = -out_ref[...] * msk_ref[...]


def language_model_criterion(inp, target, mask, *, tm_max=256, tv_max=4096):
    """inp: (B, T, V) log-probs, target: (B, T_full) int, mask: (B, T_full) float."""
    B, T, V = inp.shape
    target = target[:, :T].astype(jnp.int32)              # target[:, :input.size(1)]
    mask = mask[:, :T].astype(jnp.float32)                 # mask[:, :input.size(1)]
    den = jnp.sum(mask)                                    # tiny -> compute in XLA

    N = B * T
    inp2 = inp.reshape(N, V)                               # keep native dtype (f32/bf16)
    tgt2 = target.reshape(N, 1)
    msk2 = mask.reshape(N, 1)

    # Tile sizes: largest that fit comfortably in VMEM (double-buffered input tile
    # is <= 2 * 256*4096*4B = 8 MiB in f32), clamped for small shapes.
    TM = min(tm_max, _round_up(N, 8))
    TV = min(tv_max, _round_up(V, 128))
    N_pad = _round_up(N, TM)
    V_pad = _round_up(V, TV)

    if V_pad != V or N_pad != N:
        inp2 = jnp.pad(inp2, ((0, N_pad - N), (0, V_pad - V)))
    if N_pad != N:
        tgt2 = jnp.pad(tgt2, ((0, N_pad - N), (0, 0)))
        msk2 = jnp.pad(msk2, ((0, N_pad - N), (0, 0)))     # mask=0 zeroes padded rows

    grid = (N_pad // TM, V_pad // TV)                      # rows parallel, vocab last

    per_row = pl.pallas_call(
        lm_criterion_kernel,
        out_shape=jax.ShapeDtypeStruct((N_pad, 1), jnp.float32),
        grid_spec=pltpu.PrefetchScalarGridSpec(
            num_scalar_prefetch=0,
            grid=grid,
            in_specs=[
                pl.BlockSpec((TM, TV), lambda i, j: (i, j)),   # log-prob tile
                pl.BlockSpec((TM, 1), lambda i, j: (i, 0)),    # targets (resident over V)
                pl.BlockSpec((TM, 1), lambda i, j: (i, 0)),    # mask    (resident over V)
            ],
            out_specs=pl.BlockSpec((TM, 1), lambda i, j: (i, 0)),
        ),
        compiler_params=pltpu.CompilerParams(
            dimension_semantics=("parallel", "arbitrary"),
            vmem_limit_bytes=48 << 20,   # large tiles on v5e/v6e, still fits v7x 64 MiB
        ),
    )(inp2, tgt2, msk2)

    # Matches PyTorch: no guard against an all-zero mask (div-by-zero propagates).
    return jnp.sum(per_row) / den


def _reference(inp, target, mask):
    B, T, V = inp.shape
    tgt_t = target[:, :T]
    msk_t = mask[:, :T].astype(jnp.float32)
    gathered = jnp.take_along_axis(inp, tgt_t[:, :, None], axis=2)[:, :, 0]
    return jnp.sum(-gathered * msk_t) / jnp.sum(msk_t)


if __name__ == "__main__":
    key = jax.random.PRNGKey(0)

    # --- main small-shape check (matches module convention: target/mask longer than T)
    B, T, V = 2, 8, 32
    T_full = 10
    k1, k2, _ = jax.random.split(key, 3)
    log_probs = jax.nn.log_softmax(
        jax.random.normal(k1, (B, T, V), dtype=jnp.float32), axis=-1)
    target = jax.random.randint(k2, (B, T_full), 0, V, dtype=jnp.int32)
    lengths = jnp.array([T_full, 6], dtype=jnp.int32)
    mask = (jnp.arange(T_full)[None, :] < lengths[:, None]).astype(jnp.float32)

    loss = jax.block_until_ready(language_model_criterion(log_probs, target, mask))
    ref = _reference(log_probs, target, mask)
    assert jnp.allclose(loss, ref, rtol=1e-5, atol=1e-5), (loss, ref)

    # --- second check that exercises multi-tile grid (row tiles + vocab-reduction tiles)
    B2, T2, V2 = 2, 8, 300
    k3, k4 = jax.random.split(k1)
    lp2 = jax.nn.log_softmax(jax.random.normal(k3, (B2, T2, V2), jnp.float32), axis=-1)
    tgt2 = jax.random.randint(k4, (B2, T_full), 0, V2, dtype=jnp.int32)
    loss2 = jax.block_until_ready(
        language_model_criterion(lp2, tgt2, mask, tm_max=8, tv_max=128))
    ref2 = _reference(lp2, tgt2, mask)
    assert jnp.allclose(loss2, ref2, rtol=1e-5, atol=1e-5), (loss2, ref2)

    print("KERNEL_OK")
</pallas_src>

<mosaic_0001>
module attributes {stable_mosaic.version = 11 : i64} {
  func.func @lm_criterion_kernel(%arg0: i32, %arg1: i32, %arg2: memref<16x128xf32, #tpu.memory_space<vmem>>, %arg3: memref<16x1xi32, #tpu.memory_space<vmem>>, %arg4: memref<16x1xf32, #tpu.memory_space<vmem>>, %arg5: memref<16x1xf32, #tpu.memory_space<vmem>>) attributes {dimension_semantics = [#tpu.dimension_semantics<parallel>, #tpu.dimension_semantics<arbitrary>], iteration_bounds = array<i64: 1, 1>, scalar_prefetch = 0 : i64, scratch_operands = 0 : i64, tpu.core_type = #tpu.core_type<tc>, window_params = [{transform_indices = @transform_0, window_bounds = array<i64: 16, 128>}, {transform_indices = @transform_1, window_bounds = array<i64: 16, 1>}, {transform_indices = @transform_2, window_bounds = array<i64: 16, 1>}, {transform_indices = @transform_3, window_bounds = array<i64: 16, 1>}]} {
    %c0_i32 = arith.constant 0 : i32
    %0 = arith.cmpi eq, %arg1, %c0_i32 : i32
    %1 = arith.extui %0 : i1 to i32
    %c0_i32_0 = arith.constant 0 : i32
    %2 = arith.cmpi ne, %1, %c0_i32_0 : i32
    scf.if %2 {
      %cst_11 = arith.constant 0.000000e+00 : f32
      %22 = vector.broadcast %cst_11 : f32 to vector<16x1xf32>
      %c0_12 = arith.constant 0 : index
      %c0_13 = arith.constant 0 : index
      %23 = vector.load %arg5[%c0_12, %c0_13] : memref<16x1xf32, #tpu.memory_space<vmem>>, vector<16x1xf32>
      tpu.vector_store %arg5[%c0_12, %c0_13], %22 {strides = array<i32>} : memref<16x1xf32, #tpu.memory_space<vmem>>, vector<16x1xf32>,
    } else {
    }
    %3 = tpu.iota {dimensions = array<i32: 1>} : vector<16x128xi32>
    %c128_i32 = arith.constant 128 : i32
    %4 = arith.muli %arg1, %c128_i32 : i32
    %5 = vector.broadcast %4 : i32 to vector<16x128xi32>
    %6 = arith.addi %3, %5 : vector<16x128xi32>
    %c0 = arith.constant 0 : index
    %c0_1 = arith.constant 0 : index
    %7 = vector.load %arg3[%c0, %c0_1] : memref<16x1xi32, #tpu.memory_space<vmem>>, vector<16x1xi32>
    %8 = vector.broadcast %7 : vector<16x1xi32> to vector<16x128xi32>
    %9 = arith.cmpi eq, %6, %8 : vector<16x128xi32>
    %c0_2 = arith.constant 0 : index
    %c0_3 = arith.constant 0 : index
    %10 = vector.load %arg2[%c0_2, %c0_3] : memref<16x128xf32, #tpu.memory_space<vmem>>, vector<16x128xf32>
    %c0_i32_4 = arith.constant 0 : i32
    %11 = arith.sitofp %c0_i32_4 : i32 to f32
    %12 = vector.broadcast %11 : f32 to vector<16x128xf32>
    %13 = arith.select %9, %10, %12 : vector<16x128xi1>, vector<16x128xf32>
    %c0_5 = arith.constant 0 : index
    %c0_6 = arith.constant 0 : index
    %14 = vector.load %arg5[%c0_5, %c0_6] : memref<16x1xf32, #tpu.memory_space<vmem>>, vector<16x1xf32>
    %cst = arith.constant dense<0.000000e+00> : vector<16xf32>
    %15 = vector.multi_reduction <add>, %13, %cst [1] : vector<16x128xf32> to vector<16xf32>
    %16 = vector.shape_cast %15 : vector<16xf32> to vector<16x1xf32>
    %17 = arith.addf %14, %16 : vector<16x1xf32>
    %c0_7 = arith.constant 0 : index
    %c0_8 = arith.constant 0 : index
    %18 = vector.load %arg5[%c0_7, %c0_8] : memref<16x1xf32, #tpu.memory_space<vmem>>, vector<16x1xf32>
    tpu.vector_store %arg5[%c0_7, %c0_8], %17 {strides = array<i32>} : memref<16x1xf32, #tpu.memory_space<vmem>>, vector<16x1xf32>,
    %c0_i32_9 = arith.constant 0 : i32
    %19 = arith.cmpi eq, %arg1, %c0_i32_9 : i32
    %20 = arith.extui %19 : i1 to i32
    %c0_i32_10 = arith.constant 0 : i32
    %21 = arith.cmpi ne, %20, %c0_i32_10 : i32
    scf.if %21 {
      %c0_11 = arith.constant 0 : index
      %c0_12 = arith.constant 0 : index
      %22 = vector.load %arg5[%c0_11, %c0_12] : memref<16x1xf32, #tpu.memory_space<vmem>>, vector<16x1xf32>
      %cst_13 = arith.constant 0.000000e+00 : f32
      %23 = vector.broadcast %cst_13 : f32 to vector<16x1xf32>
      %24 = arith.subf %23, %22 : vector<16x1xf32>
      %c0_14 = arith.constant 0 : index
      %c0_15 = arith.constant 0 : index
      %25 = vector.load %arg4[%c0_14, %c0_15] : memref<16x1xf32, #tpu.memory_space<vmem>>, vector<16x1xf32>
      %26 = arith.mulf %24, %25 : vector<16x1xf32>
      %c0_16 = arith.constant 0 : index
      %c0_17 = arith.constant 0 : index
      %27 = vector.load %arg5[%c0_16, %c0_17] : memref<16x1xf32, #tpu.memory_space<vmem>>, vector<16x1xf32>
      tpu.vector_store %arg5[%c0_16, %c0_17], %26 {strides = array<i32>} : memref<16x1xf32, #tpu.memory_space<vmem>>, vector<16x1xf32>,
    } else {
    }
    return
  }
  func.func @transform_0(%arg0: i32, %arg1: i32) -> (i32, i32) {
    %c0_i32 = arith.constant 0 : i32
    return %arg0, %arg1 : i32, i32
  }
  func.func @transform_1(%arg0: i32, %arg1: i32) -> (i32, i32) {
    %c0_i32 = arith.constant 0 : i32
    %c0_i32_0 = arith.constant 0 : i32
    return %arg0, %c0_i32 : i32, i32
  }
  func.func @transform_2(%arg0: i32, %arg1: i32) -> (i32, i32) {
    %c0_i32 = arith.constant 0 : i32
    %c0_i32_0 = arith.constant 0 : i32
    return %arg0, %c0_i32 : i32, i32
  }
  func.func @transform_3(%arg0: i32, %arg1: i32) -> (i32, i32) {
    %c0_i32 = arith.constant 0 : i32
    %c0_i32_0 = arith.constant 0 : i32
    return %arg0, %c0_i32 : i32, i32
  }
}

</mosaic_0001>

<bundles_post_ra>
// kernel: tpu_custom_call.1
= control target key start
LH: loop header
LB: loop body
LE: loop exit
PB: predicated region body
PF: predicated region fallthrough
CT: control target
= control target key end

     0   :  { %v71_v0 = vmov 0   ;;  %vm18_vm0 = vcmask 7168   ;;  %v72_v3 = vmov 0.0   ;;  %v21_v4 = vlaneseq  ;;  %s147_s1 = inlined_call_operand.vmem [shape: s32[16,1], index: 1, kind: input, shape index: {}]   ;;  %s148_s3 = inlined_call_operand.vmem [shape: f32[16,1], index: 3, kind: output, shape index: {}]   ;;  %s149_s0 = inlined_call_operand.vmem [shape: f32[16,128], index: 0, kind: input, shape index: {}]   ;;  %s150_s2 = inlined_call_operand.vmem [shape: f32[16,1], index: 2, kind: input, shape index: {}]  }
   0x1   :  { %70 = vset.pattern.permute.xlu0 %v71_v0  ;;  %v26_v1 = vld [vmem:[%s147_s1] sm:$0xff]  ;;  %v27_v2 = vld [vmem:[%s147_s1 + $0x8] sm:$0xff]  ;;  %19 = vst.msk [vmem:[%s148_s3] sm:$0xff] %vm18_vm0, %v72_v3  ;;  %20 = vst.msk [vmem:[%s148_s3 + $0x8] sm:$0xff] %vm18_vm0, %v72_v3 }
   0x2   :  { %29 = vperm.xlu0 %70, %v26_v1   ;;  %v22_v5 = vand.u32 127, %v21_v4  ;;  %v36_v6 = vld [vmem:[%s149_s0] sm:$0xff]  ;;  %v37_v9 = vld [vmem:[%s149_s0 + $0x8] sm:$0xff] }
   0x3   :  { %v58_v18 = vld [vmem:[%s150_s2] sm:$0xff]  ;;  %v59_v22 = vld [vmem:[%s150_s2 + $0x8] sm:$0xff] }
   0x6   :  { %32 = vperm.xlu0 %70, %v27_v2  }
   0x8   :  { %v40_v12 = vld [vmem:[%s148_s3] sm:$0xff]  ;;  %v41_v15 = vld [vmem:[%s148_s3 + $0x8] sm:$0xff] }
  0x7d   :  { %v30_v7 = vpop.permute.xlu0 %29 }
  0x7e   :  { %vm34_vm1 = vcmp.eq.s32.totalorder %v22_v5, %v30_v7 }
  0x7f   :  { %v38_v8 = vsel %vm34_vm1, %v36_v6, 0.0 }
  0x80   :  { %42 = vadd.xlane.f32.xlu1 %v38_v8 }
  0x81   :  { %v33_v10 = vpop.permute.xlu0 %32 }
  0x82   :  { %vm35_vm2 = vcmp.eq.s32.totalorder %v22_v5, %v33_v10 }
  0x83   :  { %v39_v11 = vsel %vm35_vm2, %v37_v9, 0.0 }
  0x84   :  { %44 = vadd.xlane.f32.xlu1 %v39_v11 }
 0x109   :  { %v43_v13 = vpop.xlane.xlu1 %42 }
 0x10a   :  { %v46_v14 = vadd.f32 %v43_v13, %v40_v12 }
 0x10c   :  { %49 = vst.msk [vmem:[%s148_s3] sm:$0xff] %vm18_vm0, %v46_v14 }
 0x10d   :  { %v45_v16 = vpop.xlane.xlu1 %44 }
 0x10e   :  { %v47_v17 = vadd.f32 %v45_v16, %v41_v15 }
 0x110   :  { %50 = vst.msk [vmem:[%s148_s3 + $0x8] sm:$0xff] %vm18_vm0, %v47_v17 }
 0x113   :  { %v54_v19 = vld [vmem:[%s148_s3] sm:$0xff] }
 0x114   :  { %v56_v20 = vsub.f32 0.0, %v54_v19 }
 0x116   :  { %v60_v21 = vmul.f32 %v58_v18, %v56_v20 }
 0x117   :  { %v55_v23 = vld [vmem:[%s148_s3 + $0x8] sm:$0xff] }
 0x118   :  { %62 = vst.msk [vmem:[%s148_s3] sm:$0xff] %vm18_vm0, %v60_v21  ;;  %v57_v24 = vsub.f32 0.0, %v55_v23 }
 0x11a   :  { %v61_v25 = vmul.f32 %v59_v22, %v57_v24 }
 0x11c   :  { %63 = vst.msk [vmem:[%s148_s3 + $0x8] sm:$0xff] %vm18_vm0, %v61_v25 }

</bundles_post_ra>
